<compile_context>
chip_gen: v5e
topology: v5e:2x2
jax: 0.10.0
libtpu: 0.0.40
codegen_flags: <defaults>
</compile_context>

<pallas_src>
import functools

import jax
import jax.numpy as jnp
from jax.experimental import pallas as pl
from jax.experimental.pallas import tpu as pltpu

# Deterministic "parameters" of the configured pipeline.
_BRIGHTNESS_FACTOR = 1.25
_CONTRAST_FACTOR = 0.8
_NORM_MEAN = (0.485, 0.456, 0.406)
_NORM_STD = (0.229, 0.224, 0.225)

# torchvision / horizonms rgb_to_grayscale weights.
_GRAY_R, _GRAY_G, _GRAY_B = 0.2989, 0.587, 0.114

# ---- Compile-time constant folding -----------------------------------------
# Uint8ToFloat (/255) and Brightness (*factor) fold into one multiply.
_IN_SCALE = _BRIGHTNESS_FACTOR / 255.0
# Invert + Normalizer fold into one per-channel affine:
#   ((1 - x) - mean) / std  =  OFFSET_c - x * INV_STD_c
_INV_STD = tuple(1.0 / s for s in _NORM_STD)
_OFFSET = tuple((1.0 - m) * inv for m, inv in zip(_NORM_MEAN, _INV_STD))

# The fused simplifications below drop the lower clamp after Brightness and
# both clamps after Contrast.  That is only valid in these parameter ranges —
# fail loudly at import time if the configured constants ever change.
assert _BRIGHTNESS_FACTOR >= 0.0, "lower clamp after Brightness was folded away"
assert 0.0 <= _CONTRAST_FACTOR <= 1.0, "clip after Contrast was folded away"


def _augment_kernel(img_ref, out_ref, *, hwp, inv_hw):
    # img_ref : (TB, 3*HWp) uint8   (raw 0..255; zero in padded lanes / rows)
    # out_ref : (TB, 3*HWp) float32
    # Each channel is a static, 128-aligned lane slice of width HWp.

    # --- Uint8ToFloat + Brightness (folded): x = min(u8 * (f/255), 1) --------
    chans = []
    for c in range(3):
        xc = img_ref[:, c * hwp:(c + 1) * hwp].astype(jnp.float32) * _IN_SCALE
        chans.append(jnp.minimum(xc, 1.0))

    # --- Contrast: per-image grayscale mean -----------------------------------
    # Zero-padded lanes contribute 0 to the sum; dividing by the true HW keeps
    # the mean exact, so lane padding never leaks into valid pixels.
    gray = _GRAY_R * chans[0] + _GRAY_G * chans[1] + _GRAY_B * chans[2]
    m = jnp.sum(gray, axis=-1, keepdims=True) * inv_hw            # (TB, 1)

    # --- Contrast + Invert + Normalizer folded into one FMA per channel ------
    #   out_c = (1 - (cf*x_c + (1-cf)*m) - mean_c) / std_c
    #         = [OFFSET_c - (1-cf)*INV_STD_c*m]  -  x_c * (cf*INV_STD_c)
    for c in range(3):
        scale_c = _CONTRAST_FACTOR * _INV_STD[c]                  # python scalar
        off_c = _OFFSET[c] - ((1.0 - _CONTRAST_FACTOR) * _INV_STD[c]) * m  # (TB,1)
        out_ref[:, c * hwp:(c + 1) * hwp] = off_c - chans[c] * scale_c


def _choose_tiling(B: int, C: int, HWp: int):
    """Pick (TB, steps).  TB is the full batch (small B) or a multiple of 8;
    sized for ~2 MiB of output per step and a bounded VMEM footprint, with
    >= 8 grid steps on large batches and an even step count (v7x 2 TCs)."""
    out_per_img = 4 * C * HWp                      # f32 output tile bytes / image
    # u8 in (x2 buf) + f32 out (x2 buf) + f32 temporaries (3 chans + gray) ≈ 16x
    per_img = 16 * C * HWp

    if B <= 8:
        return B, 1                                # single full-batch block

    tb = max(8, ((2 << 20) // out_per_img) // 8 * 8)        # ~2 MiB output / step
    tb = min(tb, max(8, ((12 << 20) // per_img) // 8 * 8))  # VMEM footprint cap
    tb = min(tb, max(8, (B // 8) // 8 * 8))                 # >= ~8 grid steps
    steps = -(-B // tb)
    if steps > 1 and steps % 2 == 1:
        steps += 1                                 # even steps: no 2-TC tail imbalance
    return tb, steps


@jax.jit
def sequential_augment(image_u8: jax.Array) -> jax.Array:
    """Apply the configured SequentialAugment pipeline to a uint8 NCHW batch."""
    B, C, H, W = image_u8.shape
    assert C == 3, "Contrast / grayscale path assumes RGB (3 channels)."
    HW = H * W
    HWp = -(-HW // 128) * 128                      # lane-align each channel span

    TB, steps = _choose_tiling(B, C, HWp)
    B_pad = TB * steps

    # Layout plumbing only: channels flattened into the lane dim, uint8 straight
    # into the kernel.  Pad batch (grid) and lanes (alignment) with zeros.
    x = image_u8.reshape(B, C, HW)
    if B_pad != B or HWp != HW:
        x = jnp.pad(x, ((0, B_pad - B), (0, 0), (0, HWp - HW)))
    x = x.reshape(B_pad, C * HWp)

    # Deeper input pipelining only pays off on long grids; account for its buffer.
    use_deep_pipeline = steps >= 8
    in_spec_kwargs = {"pipeline_mode": pl.Buffered(3)} if use_deep_pipeline else {}
    in_bufs = 3 if use_deep_pipeline else 2
    footprint = TB * C * HWp * (in_bufs * 1 + 2 * 4 + 6)   # u8 in + f32 out + temps
    vmem_limit = int(min(max(2 * footprint, 8 << 20), 64 << 20))

    kernel = functools.partial(_augment_kernel, hwp=HWp, inv_hw=1.0 / HW)

    out = pl.pallas_call(
        kernel,
        out_shape=jax.ShapeDtypeStruct((B_pad, C * HWp), jnp.float32),
        grid=(steps,),
        in_specs=[
            pl.BlockSpec((TB, C * HWp), lambda b: (b, 0), **in_spec_kwargs),
        ],
        out_specs=pl.BlockSpec((TB, C * HWp), lambda b: (b, 0)),
        compiler_params=pltpu.CompilerParams(
            dimension_semantics=("parallel",),
            vmem_limit_bytes=vmem_limit,
        ),
        cost_estimate=pl.CostEstimate(
            flops=8 * B * C * HW,          # ~8 VPU ops / element
            transcendentals=0,
            bytes_accessed=B * C * HW * 5,  # 1 B u8 in + 4 B f32 out per element
        ),
    )(x)

    # Drop batch / lane padding (no-op slices when nothing was padded).
    out = out.reshape(B_pad, C, HWp)[:B, :, :HW]
    return out.reshape(B, C, H, W)


def _reference(image_u8: jax.Array) -> jax.Array:
    """Pure-JAX reference mirroring torchvision/horizonms functional ops."""
    x = image_u8.astype(jnp.float32) / 255.0
    x = jnp.clip(x * _BRIGHTNESS_FACTOR, 0.0, 1.0)
    gray = _GRAY_R * x[:, 0] + _GRAY_G * x[:, 1] + _GRAY_B * x[:, 2]
    m = jnp.mean(gray, axis=(1, 2)).reshape(-1, 1, 1, 1)
    x = jnp.clip(_CONTRAST_FACTOR * x + (1.0 - _CONTRAST_FACTOR) * m, 0.0, 1.0)
    x = 1.0 - x
    mean = jnp.asarray(_NORM_MEAN, jnp.float32).reshape(1, 3, 1, 1)
    std = jnp.asarray(_NORM_STD, jnp.float32).reshape(1, 3, 1, 1)
    return (x - mean) / std


if __name__ == "__main__":
    key = jax.random.PRNGKey(0)
    B, C, H, W = 2, 3, 16, 16
    image = jax.random.randint(key, (B, C, H, W), 0, 256, dtype=jnp.int32).astype(
        jnp.uint8
    )

    out = sequential_augment(image)
    out = jax.block_until_ready(out)

    ref = _reference(image)
    assert out.shape == (B, C, H, W) and out.dtype == jnp.float32
    assert jnp.allclose(out, ref, atol=1e-5, rtol=1e-5), "mismatch vs reference"

    # TODO(synk): geometric / histogram / stochastic operators (Rotate, Equalize,
    # Posterize, Random* sampling, Mixup, ...) are not representable in this
    # single fused elementwise kernel and are not part of the configured pipeline.
    print("KERNEL_OK")
</pallas_src>

<mosaic_0001>
module attributes {stable_mosaic.version = 11 : i64} {
  func.func @_augment_kernel(%arg0: i32, %arg1: memref<2x768xi8, #tpu.memory_space<vmem>>, %arg2: memref<2x768xf32, #tpu.memory_space<vmem>>) attributes {dimension_semantics = [#tpu.dimension_semantics<parallel>], iteration_bounds = array<i64: 1>, scalar_prefetch = 0 : i64, scratch_operands = 0 : i64, tpu.core_type = #tpu.core_type<tc>, window_params = [{transform_indices = @transform_0, window_bounds = array<i64: 2, 768>}, {transform_indices = @transform_1, window_bounds = array<i64: 2, 768>}]} {
    %c0 = arith.constant 0 : index
    %c0_0 = arith.constant 0 : index
    %0 = vector.load %arg1[%c0, %c0_0] : memref<2x768xi8, #tpu.memory_space<vmem>>, vector<2x256xi8>
    %1 = arith.uitofp %0 : vector<2x256xi8> to vector<2x256xf32>
    %cst = arith.constant 0.00490196096 : f32
    %2 = vector.broadcast %cst : f32 to vector<2x256xf32>
    %3 = arith.mulf %1, %2 : vector<2x256xf32>
    %cst_1 = arith.constant 1.000000e+00 : f32
    %4 = vector.broadcast %cst_1 : f32 to vector<2x256xf32>
    %5 = arith.minimumf %3, %4 : vector<2x256xf32>
    %c0_2 = arith.constant 0 : index
    %c256 = arith.constant 256 : index
    %6 = vector.load %arg1[%c0_2, %c256] : memref<2x768xi8, #tpu.memory_space<vmem>>, vector<2x256xi8>
    %7 = arith.uitofp %6 : vector<2x256xi8> to vector<2x256xf32>
    %cst_3 = arith.constant 0.00490196096 : f32
    %8 = vector.broadcast %cst_3 : f32 to vector<2x256xf32>
    %9 = arith.mulf %7, %8 : vector<2x256xf32>
    %cst_4 = arith.constant 1.000000e+00 : f32
    %10 = vector.broadcast %cst_4 : f32 to vector<2x256xf32>
    %11 = arith.minimumf %9, %10 : vector<2x256xf32>
    %c0_5 = arith.constant 0 : index
    %c512 = arith.constant 512 : index
    %12 = vector.load %arg1[%c0_5, %c512] : memref<2x768xi8, #tpu.memory_space<vmem>>, vector<2x256xi8>
    %13 = arith.uitofp %12 : vector<2x256xi8> to vector<2x256xf32>
    %cst_6 = arith.constant 0.00490196096 : f32
    %14 = vector.broadcast %cst_6 : f32 to vector<2x256xf32>
    %15 = arith.mulf %13, %14 : vector<2x256xf32>
    %cst_7 = arith.constant 1.000000e+00 : f32
    %16 = vector.broadcast %cst_7 : f32 to vector<2x256xf32>
    %17 = arith.minimumf %15, %16 : vector<2x256xf32>
    %cst_8 = arith.constant 2.989000e-01 : f32
    %18 = vector.broadcast %cst_8 : f32 to vector<2x256xf32>
    %19 = arith.mulf %18, %5 : vector<2x256xf32>
    %cst_9 = arith.constant 5.870000e-01 : f32
    %20 = vector.broadcast %cst_9 : f32 to vector<2x256xf32>
    %21 = arith.mulf %20, %11 : vector<2x256xf32>
    %22 = arith.addf %19, %21 : vector<2x256xf32>
    %cst_10 = arith.constant 1.140000e-01 : f32
    %23 = vector.broadcast %cst_10 : f32 to vector<2x256xf32>
    %24 = arith.mulf %23, %17 : vector<2x256xf32>
    %25 = arith.addf %22, %24 : vector<2x256xf32>
    %cst_11 = arith.constant dense<0.000000e+00> : vector<2xf32>
    %26 = vector.multi_reduction <add>, %25, %cst_11 [1] : vector<2x256xf32> to vector<2xf32>
    %27 = vector.shape_cast %26 : vector<2xf32> to vector<2x1xf32>
    %cst_12 = arith.constant 3.906250e-03 : f32
    %28 = vector.broadcast %cst_12 : f32 to vector<2x1xf32>
    %29 = arith.mulf %27, %28 : vector<2x1xf32>
    %cst_13 = arith.constant 0.873362421 : f32
    %30 = vector.broadcast %cst_13 : f32 to vector<2x1xf32>
    %31 = arith.mulf %30, %29 : vector<2x1xf32>
    %cst_14 = arith.constant 2.24890828 : f32
    %32 = vector.broadcast %cst_14 : f32 to vector<2x1xf32>
    %33 = arith.subf %32, %31 : vector<2x1xf32>
    %cst_15 = arith.constant 3.49344969 : f32
    %34 = vector.broadcast %cst_15 : f32 to vector<2x256xf32>
    %35 = arith.mulf %5, %34 : vector<2x256xf32>
    %36 = vector.broadcast %33 : vector<2x1xf32> to vector<2x256xf32>
    %37 = arith.subf %36, %35 : vector<2x256xf32>
    %c0_16 = arith.constant 0 : index
    %c0_17 = arith.constant 0 : index
    %38 = vector.load %arg2[%c0_16, %c0_17] : memref<2x768xf32, #tpu.memory_space<vmem>>, vector<2x256xf32>
    tpu.vector_store %arg2[%c0_16, %c0_17], %37 {strides = array<i32>} : memref<2x768xf32, #tpu.memory_space<vmem>>, vector<2x256xf32>,
    %cst_18 = arith.constant 0.892857134 : f32
    %39 = vector.broadcast %cst_18 : f32 to vector<2x1xf32>
    %40 = arith.mulf %39, %29 : vector<2x1xf32>
    %cst_19 = arith.constant 2.42857146 : f32
    %41 = vector.broadcast %cst_19 : f32 to vector<2x1xf32>
    %42 = arith.subf %41, %40 : vector<2x1xf32>
    %cst_20 = arith.constant 3.57142854 : f32
    %43 = vector.broadcast %cst_20 : f32 to vector<2x256xf32>
    %44 = arith.mulf %11, %43 : vector<2x256xf32>
    %45 = vector.broadcast %42 : vector<2x1xf32> to vector<2x256xf32>
    %46 = arith.subf %45, %44 : vector<2x256xf32>
    %c0_21 = arith.constant 0 : index
    %c256_22 = arith.constant 256 : index
    %47 = vector.load %arg2[%c0_21, %c256_22] : memref<2x768xf32, #tpu.memory_space<vmem>>, vector<2x256xf32>
    tpu.vector_store %arg2[%c0_21, %c256_22], %46 {strides = array<i32>} : memref<2x768xf32, #tpu.memory_space<vmem>>, vector<2x256xf32>,
    %cst_23 = arith.constant 0.888888895 : f32
    %48 = vector.broadcast %cst_23 : f32 to vector<2x1xf32>
    %49 = arith.mulf %48, %29 : vector<2x1xf32>
    %cst_24 = arith.constant 2.640000e+00 : f32
    %50 = vector.broadcast %cst_24 : f32 to vector<2x1xf32>
    %51 = arith.subf %50, %49 : vector<2x1xf32>
    %cst_25 = arith.constant 3.55555558 : f32
    %52 = vector.broadcast %cst_25 : f32 to vector<2x256xf32>
    %53 = arith.mulf %17, %52 : vector<2x256xf32>
    %54 = vector.broadcast %51 : vector<2x1xf32> to vector<2x256xf32>
    %55 = arith.subf %54, %53 : vector<2x256xf32>
    %c0_26 = arith.constant 0 : index
    %c512_27 = arith.constant 512 : index
    %56 = vector.load %arg2[%c0_26, %c512_27] : memref<2x768xf32, #tpu.memory_space<vmem>>, vector<2x256xf32>
    tpu.vector_store %arg2[%c0_26, %c512_27], %55 {strides = array<i32>} : memref<2x768xf32, #tpu.memory_space<vmem>>, vector<2x256xf32>,
    return
  }
  func.func @transform_0(%arg0: i32) -> (i32, i32) {
    %c0_i32 = arith.constant 0 : i32
    %c0_i32_0 = arith.constant 0 : i32
    return %arg0, %c0_i32 : i32, i32
  }
  func.func @transform_1(%arg0: i32) -> (i32, i32) {
    %c0_i32 = arith.constant 0 : i32
    %c0_i32_0 = arith.constant 0 : i32
    return %arg0, %c0_i32 : i32, i32
  }
}

</mosaic_0001>

<bundles_post_ra>
// kernel: sequential_augment.1
= control target key start
LH: loop header
LB: loop body
LE: loop exit
PB: predicated region body
PF: predicated region fallthrough
CT: control target
= control target key end

     0   :  { %vm37_vm0 = vcmask 1041408   ;;  %s133_s0 = inlined_call_operand.vmem [shape: u8[2,768], index: 0, kind: input, shape index: {}]   ;;  %s134_s1 = inlined_call_operand.vmem [shape: f32[2,768], index: 1, kind: output, shape index: {}]  }
   0x1   :  { %v100_v0 = vld [vmem:[%s133_s0] sm:$0xf]   ;;  %v20_v1 = vld [vmem:[%s133_s0 + $0x4] sm:$0x3] }
   0x2   :  { %v101_v2 = vunpack.c.0.s8 %v100_v0  ;;  %v102_v3 = vunpack.c.1.s8 %v100_v0  ;;  %v21_v4 = vunpack.c.0.s8 %v20_v1 }
   0x4   :  { %v10_v5 = vand.u32 255, %v101_v2  ;;  %v16_v6 = vand.u32 255, %v102_v3  ;;  %v22_v7 = vand.u32 255, %v21_v4 }
   0x6   :  { %v11_v8 = vcvt.s32.f32 %v10_v5  ;;  %v17_v9 = vcvt.s32.f32 %v16_v6  ;;  %v23_v10 = vcvt.s32.f32 %v22_v7 }
   0x8   :  { %v12_v11 = vmul.f32 0.004901961, %v11_v8  ;;  %v18_v12 = vmul.f32 0.004901961, %v17_v9  ;;  %v24_v13 = vmul.f32 0.004901961, %v23_v10 }
   0xa   :  { %v13_v14 = vmin.f32 %v12_v11, 1.0  ;;  %v19_v15 = vmin.f32 %v18_v12, 1.0  ;;  %v25_v16 = vmin.f32 %v24_v13, 1.0 }
   0xc   :  { %v26_v17 = vmul.f32 0.2989, %v13_v14  ;;  %v27_v18 = vmul.f32 0.587, %v19_v15  ;;  %v29_v19 = vmul.f32 0.114, %v25_v16 }
   0xd   :  { %v46_v22 = vmul.f32 3.4934497, %v13_v14  ;;  %v63_v28 = vmul.f32 3.5714285, %v19_v15  ;;  %v80_v31 = vmul.f32 3.5555556, %v25_v16 }
   0xe   :  { %v28_v20 = vadd.f32 %v27_v18, %v26_v17 }
  0x10   :  { %v30_v21 = vadd.f32 %v29_v19, %v28_v20 }
  0x12   :  { %32 = vst [vmem:[#allocation1] ss:$2 sm:$0xff] %v30_v21 }
  0x19   :  { %v33_v23 = vld.sshfl [vmem:[#allocation1] sm:$0xff pattern:$0x75316420]  ;;  %v34_v24 = vld.sshfl [vmem:[#allocation1 + $0x8] sm:$0xff pattern:$0x75316420] }
  0x1a   :  { %v38_v25 = vsel %vm37_vm0, %v33_v23, 0.0  ;;  %v39_v26 = vsel %vm37_vm0, %v34_v24, 0.0  ;;  %48 = vst [vmem:[#allocation1] ss:$2 sm:$0xff] %v46_v22 }
  0x1b   :  { %v40_v27 = vadd.f32 %v39_v26, %v38_v25 }
  0x1d   :  { %41 = vadd.xlane.f32.xlu0 %v40_v27 }
  0x21   :  { %v49_v29 = vld.sshfl [vmem:[#allocation1] sm:$0xff pattern:$0x75316420]  ;;  %v50_v30 = vld.sshfl [vmem:[#allocation1 + $0x8] sm:$0xff pattern:$0x75316420] }
  0x22   :  { %65 = vst [vmem:[#allocation1] ss:$2 sm:$0xff] %v63_v28 }
  0x29   :  { %v66_v32 = vld.sshfl [vmem:[#allocation1] sm:$0xff pattern:$0x75316420]  ;;  %v67_v33 = vld.sshfl [vmem:[#allocation1 + $0x8] sm:$0xff pattern:$0x75316420] }
  0x2a   :  { %82 = vst [vmem:[#allocation1] ss:$2 sm:$0xff] %v80_v31 }
  0x31   :  { %v84_v39 = vld.sshfl [vmem:[#allocation1 + $0x8] sm:$0xff pattern:$0x75316420]  ;;  %v83_v45 = vld.sshfl [vmem:[#allocation1] sm:$0xff pattern:$0x75316420] }
  0x90   :  { %v42_v34 = vpop.xlane.xlu0 %41 }
  0x91   :  { %v43_v35 = vmul.f32 0.00390625, %v42_v34 }
  0x93   :  { %v44_v36 = vmul.f32 0.8733624, %v43_v35  ;;  %v61_v37 = vmul.f32 0.89285713, %v43_v35  ;;  %v78_v38 = vmul.f32 0.8888889, %v43_v35 }
  0x95   :  { %v45_v40 = vsub.f32 2.2489083, %v44_v36  ;;  %v62_v41 = vsub.f32 2.4285715, %v61_v37  ;;  %v79_v42 = vsub.f32 2.64, %v78_v38 }
  0x97   :  { %v54_v43 = vsub.f32 %v45_v40, %v50_v30  ;;  %v71_v44 = vsub.f32 %v62_v41, %v67_v33  ;;  %v88_v46 = vsub.f32 %v79_v42, %v84_v39  ;;  %v53_v47 = vsub.f32 %v45_v40, %v49_v29 }
  0x98   :  { %v70_v49 = vsub.f32 %v62_v41, %v66_v32  ;;  %v87_v51 = vsub.f32 %v79_v42, %v83_v45 }
  0x99   :  { %v57_v48 = vrot.slane %v54_v43, 6  ;;  %v74_v50 = vrot.slane %v71_v44, 6  ;;  %v91_v52 = vrot.slane %v88_v46, 6 }
  0x9b   :  { %v58_v53 = vsel %vm37_vm0, %v53_v47, %v57_v48  ;;  %v75_v54 = vsel %vm37_vm0, %v70_v49, %v74_v50  ;;  %v92_v55 = vsel %vm37_vm0, %v87_v51, %v91_v52 }
  0x9c   :  { %60 = vst [vmem:[%s134_s1] sm:$0xf] %v58_v53 }
  0x9d   :  { %77 = vst [vmem:[%s134_s1 + $0x4] sm:$0xf] %v75_v54 }
  0x9e   :  { %94 = vst [vmem:[%s134_s1 + $0x8] sm:$0xf] %v92_v55 }

</bundles_post_ra>
